<compile_context>
chip_gen: v7x
topology: tpu7x:2x2x1
jax: 0.10.0
libtpu: 0.0.40
codegen_flags: <defaults>
</compile_context>

<pallas_src>
import functools

import jax
import jax.numpy as jnp
from jax.experimental import pallas as pl
from jax.experimental.pallas import tpu as pltpu


# ---------------------------------------------------------------------------
# Kernel body
# ---------------------------------------------------------------------------
def _residual_linear_kernel(x_ref, w_ref, b_ref, o_ref):
    # x_ref: (tm, D) activations   w_ref: (D, D) bf16 weight, (in, out) layout
    # b_ref: (1, D) f32 bias       o_ref: (tm, D)
    x = x_ref[...]
    x_mxu = x if x.dtype == w_ref.dtype else x.astype(w_ref.dtype)
    # MXU matmul in the weight dtype (bf16), f32 accumulation.
    y = jnp.dot(x_mxu, w_ref[...], preferred_element_type=jnp.float32)
    y = y + b_ref[...].astype(jnp.float32)            # bias (broadcast over rows)
    # Re-read x from VMEM for the residual add so an f32 copy is not kept live
    # across the MXU call (lower vreg / VMEM-temporary pressure at large tm).
    o_ref[...] = (x_ref[...].astype(jnp.float32) + y).astype(o_ref.dtype)


# ---------------------------------------------------------------------------
# Hardware / capability queries (build-time only)
# ---------------------------------------------------------------------------
def _tpu_vmem_and_cores():
    """Per-core VMEM capacity (bytes) and TensorCore count, with safe fallbacks."""
    vmem_cap = 64 << 20          # conservative default (v7x per-TC VMEM)
    n_cores = 1
    try:
        info = pltpu.get_tpu_info()
        cap = getattr(info, "vmem_capacity_bytes", None)
        if cap:
            vmem_cap = int(cap)
        for name in ("num_cores", "num_tensorcores", "tensorcore_count",
                     "core_count"):
            v = getattr(info, name, None)
            if v:
                n_cores = int(v)
                break
    except Exception:
        pass
    return vmem_cap, n_cores


@functools.lru_cache(maxsize=None)
def _single_buffered_spec_supported():
    """Build-time capability probe for pl.Buffered(1) (single-buffered resident
    operands). Compile-only: real kernel execution is never wrapped."""
    if not hasattr(pl, "Buffered"):
        return False
    try:
        def _probe(a_ref, w_ref, o_ref):
            o_ref[...] = a_ref[...] + w_ref[...]

        call = pl.pallas_call(
            _probe,
            out_shape=jax.ShapeDtypeStruct((16, 128), jnp.float32),
            grid_spec=pltpu.PrefetchScalarGridSpec(
                num_scalar_prefetch=0,
                grid=(2,),
                in_specs=[
                    pl.BlockSpec((8, 128), lambda i: (i, 0)),
                    pl.BlockSpec((8, 128), lambda i: (0, 0),
                                 pipeline_mode=pl.Buffered(1)),
                ],
                out_specs=pl.BlockSpec((8, 128), lambda i: (i, 0)),
            ),
        )
        jax.jit(call).lower(
            jax.ShapeDtypeStruct((16, 128), jnp.float32),
            jax.ShapeDtypeStruct((8, 128), jnp.float32),
        ).compile()
        return True
    except Exception:
        return False


# ---------------------------------------------------------------------------
# Tile-size heuristic
# ---------------------------------------------------------------------------
def _choose_tm(M, D, x_itemsize, out_itemsize, resident_bytes, vmem_budget,
               n_cores):
    """Row tile: sized from the VMEM budget and per-step HBM bytes.

    - never split tiny problems (per-step x+out traffic would be < ~1 MiB;
      the ~0.35us/step overhead would dominate the actual HBM time),
    - otherwise guarantee >= 2 grid steps per TensorCore so each core keeps
      double-buffered x/out pipelining after megacore sharding,
    - clamp to what fits next to the resident weight/bias in VMEM.
    """
    if M <= 128:
        return M                                      # tiny problem: single tile

    # Rows that fit in VMEM alongside the resident weight+bias (x and out
    # tiles are each double-buffered by the pipeline).
    per_row_pipeline = 2 * D * (x_itemsize + out_itemsize)
    avail = max(vmem_budget - resident_bytes, per_row_pipeline * 8)
    tm_vmem = max(8, avail // per_row_pipeline)

    per_row_io = D * (x_itemsize + out_itemsize)
    target_steps = max(2 * n_cores, 2)                # >= 2 steps per TC
    min_step_bytes = 1 << 20
    if M * per_row_io >= target_steps * min_step_bytes:
        tm = max(128, M // target_steps)
    else:
        tm = M                                        # don't split tiny problems

    tm = min(tm, tm_vmem, M)
    if tm < M:
        tm = max(128, (tm // 128) * 128)              # 128-aligned row tiles
        tm = min(tm, M)
    return int(tm)


# ---------------------------------------------------------------------------
# pallas_call builder (cached per shape/dtype config)
# ---------------------------------------------------------------------------
@functools.lru_cache(maxsize=None)
def _residual_linear_fn(M, D, x_dtype_name, w_dtype_name, b_dtype_name,
                        out_dtype_name, tm_req, alias_input):
    x_dtype = jnp.dtype(x_dtype_name)
    w_dtype = jnp.dtype(w_dtype_name)
    b_dtype = jnp.dtype(b_dtype_name)
    out_dtype = jnp.dtype(out_dtype_name)

    vmem_cap, n_cores = _tpu_vmem_and_cores()
    # Generation-aware budget: full capacity minus headroom for Mosaic-internal
    # scratch; keep v5e's 16 MiB scoped default as a floor.
    vmem_budget = max(vmem_cap - (12 << 20), 16 << 20)

    single_buffer = _single_buffered_spec_supported()
    w_bufs = 1 if single_buffer else 2
    resident_bytes = w_bufs * (D * D * w_dtype.itemsize + D * b_dtype.itemsize)

    # Resident-weight path only (see TODO at top for the K/N-tiled path).
    min_pipeline = 2 * 128 * D * (x_dtype.itemsize + out_dtype.itemsize)
    if resident_bytes + min_pipeline > vmem_budget:
        raise NotImplementedError(
            f"D={D}: resident weight ({resident_bytes >> 20} MiB) does not fit "
            f"the VMEM budget ({vmem_budget >> 20} MiB); K/N-tiled fallback "
            "not implemented.")

    tm = tm_req if tm_req > 0 else _choose_tm(
        M, D, x_dtype.itemsize, out_dtype.itemsize,
        resident_bytes, vmem_budget, n_cores)
    tm = min(tm, M)
    grid = (pl.cdiv(M, tm),)

    # Accurate footprint (no 2x hedging): resident weight/bias + double-
    # buffered x and out tiles, plus a small pad for compiler scratch.
    est_vmem = (resident_bytes
                + 2 * tm * D * x_dtype.itemsize
                + 2 * tm * D * out_dtype.itemsize)
    vmem_limit = int(min(max(est_vmem + (2 << 20), 16 << 20), vmem_budget))

    bytes_accessed = (M * D * x_dtype.itemsize + D * D * w_dtype.itemsize
                      + D * b_dtype.itemsize + M * D * out_dtype.itemsize)
    cost = pl.CostEstimate(flops=2 * M * D * D + 2 * M * D,
                           transcendentals=0,
                           bytes_accessed=bytes_accessed)

    resident_kwargs = (
        {"pipeline_mode": pl.Buffered(1)} if single_buffer else {})
    # Donate x's HBM buffer to the output when dtypes match: block i of x is
    # fully read before block i of out is written with the identical index_map.
    io_aliases = {0: 0} if (alias_input and out_dtype == x_dtype) else {}

    call = pl.pallas_call(
        _residual_linear_kernel,
        out_shape=jax.ShapeDtypeStruct((M, D), out_dtype),
        grid_spec=pltpu.PrefetchScalarGridSpec(
            num_scalar_prefetch=0,
            grid=grid,
            in_specs=[
                pl.BlockSpec((tm, D), lambda i: (i, 0)),              # x tile
                pl.BlockSpec((D, D), lambda i: (0, 0),
                             **resident_kwargs),                      # weight (resident)
                pl.BlockSpec((1, D), lambda i: (0, 0),
                             **resident_kwargs),                      # bias (resident)
            ],
            out_specs=pl.BlockSpec((tm, D), lambda i: (i, 0)),
        ),
        compiler_params=pltpu.CompilerParams(
            dimension_semantics=("parallel",),
            vmem_limit_bytes=vmem_limit,
        ),
        cost_estimate=cost,
        input_output_aliases=io_aliases,
    )
    # jit for dispatch caching; no try/except around execution.
    return jax.jit(call)


def residual_linear(x, w_t, b, *, tm=None, out_dtype=None, alias_input=True):
    """out = x + (x @ w_t + b), fused in a single Pallas kernel.

    x   : (M, D)   activations (f32 or bf16)
    w_t : (D, D)   weight, pre-transposed to (in, out), typically bf16
    b   : (D,) / (1, D) bias, f32
    out_dtype : output dtype (defaults to x.dtype). Use bf16 activations +
        bf16 output to halve x-read / out-write HBM bytes (kernel is
        memory-bound for small/medium D).
    """
    M, D = x.shape
    assert w_t.shape == (D, D), w_t.shape
    b = jnp.asarray(b).reshape(1, D)
    out_dtype = jnp.dtype(x.dtype if out_dtype is None else out_dtype)

    fn = _residual_linear_fn(
        M, D,
        jnp.dtype(x.dtype).name, jnp.dtype(w_t.dtype).name,
        jnp.dtype(b.dtype).name, out_dtype.name,
        int(tm) if tm is not None else -1,
        bool(alias_input),
    )
    return fn(x, w_t, b)


class ResidualLinear:
    """JAX analogue of Residual(nn.Linear(D, D)) with deterministic init."""

    def __init__(self, hidden, key, *, param_dtype=jnp.bfloat16):
        k_w, k_b = jax.random.split(key)
        bound = 1.0 / (hidden ** 0.5)
        # PyTorch nn.Linear init: weight (out, in), bias ~ U(-1/sqrt(in), 1/sqrt(in)).
        w = jax.random.uniform(k_w, (hidden, hidden), jnp.float32, -bound, bound)
        b = jax.random.uniform(k_b, (hidden,), jnp.float32, -bound, bound)
        # Pre-transposed to (in, out); stored bf16 for MXU peak rate and to
        # halve the resident-weight VMEM / DMA bytes. Bias stays f32.
        self.w_t = jnp.transpose(w).astype(param_dtype)
        self.b = b.reshape(1, hidden).astype(jnp.float32)

    def __call__(self, x, *, out_dtype=None):
        # x: (..., D) -> flatten leading dims (glue, plain JAX)
        lead = x.shape[:-1]
        D = x.shape[-1]
        out = residual_linear(x.reshape(-1, D), self.w_t, self.b,
                              out_dtype=out_dtype)
        return out.reshape(*lead, D)


if __name__ == "__main__":
    key = jax.random.PRNGKey(0)
    k_x, k_p = jax.random.split(key)

    # Lane-dense hidden (multiple of 128); M = batch*seq = 256. Per-step x+out
    # traffic is tiny, so the tiler keeps a single grid step (no forced split).
    batch, seq, hidden = 4, 64, 128
    x = jax.random.normal(k_x, (batch, seq, hidden), jnp.float32)

    mod = ResidualLinear(hidden, k_p)

    # --- f32 activation / f32 output path -----------------------------------
    out = jax.block_until_ready(mod(x))
    assert out.shape == x.shape and out.dtype == x.dtype

    # Reference mirroring the kernel's bf16-matmul / f32-accumulate math.
    x2 = x.reshape(-1, hidden)
    ref = x2 + (jnp.dot(x2.astype(mod.w_t.dtype), mod.w_t,
                        preferred_element_type=jnp.float32) + mod.b)
    ref = ref.reshape(batch, seq, hidden)
    assert jnp.allclose(out, ref, atol=1e-4, rtol=1e-4), (
        float(jnp.max(jnp.abs(out - ref))))

    # Looser sanity check vs a pure-f32 reference (bf16 quantization budget).
    ref_f32 = x + (x2 @ mod.w_t.astype(jnp.float32) + mod.b).reshape(
        batch, seq, hidden)
    assert jnp.allclose(out, ref_f32, atol=5e-2, rtol=5e-2)

    # --- bf16 activation / bf16 output path (halved HBM traffic) ------------
    x_bf = x.astype(jnp.bfloat16)
    out_bf = jax.block_until_ready(mod(x_bf))
    assert out_bf.shape == x.shape and out_bf.dtype == jnp.bfloat16
    x_bf2 = x_bf.reshape(-1, hidden)
    ref_bf = (x_bf2.astype(jnp.float32)
              + jnp.dot(x_bf2, mod.w_t, preferred_element_type=jnp.float32)
              + mod.b)
    assert jnp.allclose(out_bf.astype(jnp.float32).reshape(-1, hidden),
                        ref_bf, atol=3e-2, rtol=3e-2)

    print("KERNEL_OK")
</pallas_src>

<mosaic_0001>
module attributes {stable_mosaic.version = 11 : i64} {
  func.func @_residual_linear_kernel(%arg0: i32, %arg1: memref<256x128xf32, #tpu.memory_space<vmem>>, %arg2: memref<128x128xbf16, #tpu.memory_space<vmem>>, %arg3: memref<1x128xf32, #tpu.memory_space<vmem>>, %arg4: memref<256x128xf32, #tpu.memory_space<vmem>>) attributes {dimension_semantics = [#tpu.dimension_semantics<parallel>], iteration_bounds = array<i64: 1>, scalar_prefetch = 0 : i64, scratch_operands = 0 : i64, tpu.core_type = #tpu.core_type<tc>, window_params = [{transform_indices = @transform_0, window_bounds = array<i64: 256, 128>}, {pipeline_mode = #tpu.pipeline_mode<synchronous>, transform_indices = @transform_1, window_bounds = array<i64: 128, 128>}, {pipeline_mode = #tpu.pipeline_mode<synchronous>, transform_indices = @transform_2, window_bounds = array<i64: 1, 128>}, {transform_indices = @transform_3, window_bounds = array<i64: 256, 128>}]} {
    %c0 = arith.constant 0 : index
    %c0_0 = arith.constant 0 : index
    %0 = vector.load %arg1[%c0, %c0_0] : memref<256x128xf32, #tpu.memory_space<vmem>>, vector<256x128xf32>
    %1 = arith.truncf %0 : vector<256x128xf32> to vector<256x128xbf16>
    %c0_1 = arith.constant 0 : index
    %c0_2 = arith.constant 0 : index
    %2 = vector.load %arg2[%c0_1, %c0_2] : memref<128x128xbf16, #tpu.memory_space<vmem>>, vector<128x128xbf16>
    %cst = arith.constant dense<0.000000e+00> : vector<256x128xf32>
    %3 = tpu.matmul %1, %2, %cst {dimension_numbers = #tpu.dot_dimension_numbers<[1], [0], [0], [1], [0, 0, 1, 1], [], []>} : vector<256x128xbf16>, vector<128x128xbf16>, vector<256x128xf32> -> vector<256x128xf32>
    %c0_3 = arith.constant 0 : index
    %c0_4 = arith.constant 0 : index
    %4 = vector.load %arg3[%c0_3, %c0_4] : memref<1x128xf32, #tpu.memory_space<vmem>>, vector<1x128xf32>
    %5 = vector.broadcast %4 : vector<1x128xf32> to vector<256x128xf32>
    %6 = arith.addf %3, %5 : vector<256x128xf32>
    %c0_5 = arith.constant 0 : index
    %c0_6 = arith.constant 0 : index
    %7 = vector.load %arg1[%c0_5, %c0_6] : memref<256x128xf32, #tpu.memory_space<vmem>>, vector<256x128xf32>
    %8 = arith.addf %7, %6 : vector<256x128xf32>
    %c0_7 = arith.constant 0 : index
    %c0_8 = arith.constant 0 : index
    %9 = vector.load %arg4[%c0_7, %c0_8] : memref<256x128xf32, #tpu.memory_space<vmem>>, vector<256x128xf32>
    tpu.vector_store %arg4[%c0_7, %c0_8], %8 {strides = array<i32>} : memref<256x128xf32, #tpu.memory_space<vmem>>, vector<256x128xf32>,
    return
  }
  func.func @transform_0(%arg0: i32) -> (i32, i32) {
    %c0_i32 = arith.constant 0 : i32
    %c0_i32_0 = arith.constant 0 : i32
    return %arg0, %c0_i32 : i32, i32
  }
  func.func @transform_1(%arg0: i32) -> (i32, i32) {
    %c0_i32 = arith.constant 0 : i32
    %c0_i32_0 = arith.constant 0 : i32
    %c0_i32_1 = arith.constant 0 : i32
    return %c0_i32, %c0_i32_0 : i32, i32
  }
  func.func @transform_2(%arg0: i32) -> (i32, i32) {
    %c0_i32 = arith.constant 0 : i32
    %c0_i32_0 = arith.constant 0 : i32
    %c0_i32_1 = arith.constant 0 : i32
    return %c0_i32, %c0_i32_0 : i32, i32
  }
  func.func @transform_3(%arg0: i32) -> (i32, i32) {
    %c0_i32 = arith.constant 0 : i32
    %c0_i32_0 = arith.constant 0 : i32
    return %arg0, %c0_i32 : i32, i32
  }
}

</mosaic_0001>

<bundles_post_ra>
// kernel: tpu_custom_call.1
= control target key start
LH: loop header
LB: loop body
LE: loop exit
PB: predicated region body
PF: predicated region fallthrough
CT: control target
= control target key end

     0   :  { %8 = vsyncpa [#allocation3], 0  ;;  %s791_s0 = inlined_call_operand.hbm [shape: f32[256,128], index: 0, kind: input, shape index: {}, may-alias: {0,3}]   ;;  %s792_s1 = inlined_call_operand.vmem [shape: bf16[128,128], index: 1, kind: input, shape index: {}]   ;;  %s793_s2 = inlined_call_operand.vmem [shape: f32[1,128], index: 2, kind: input, shape index: {}]   ;;  %s794_s3 = inlined_call_operand.hbm [shape: f32[256,128], index: 3, kind: output, shape index: {}, may-alias: {0,3}]  }
   0x1   :  { %9 = vsyncpa [#allocation4], 0  ;;  %s548_s12 = smov [#allocation2]   ;;  %s500_s16 = scalar_lea.hbm %s791_s0, 4096 }
   0x2   :  { %s15_s13 = sshll.u32 %s548_s12, 4  ;;  %p501_p0 = scmp.ne.s32.totalorder %s791_s0, %s500_s16  ;;  %s16_s13 = int_to_ptr.vmem [resolvable:$true] %s15_s13 }
   0x3   :  { %p504_p1 = scmp.lt.u32.totalorder %s500_s16, %s791_s0 }
   0x5   :  { %p506_p2 = pnand %p504_p1, %p501_p0 }
   0x7   :  { %509 = shalt.err (!%p506_p2)
}
   0x8   :  { %s510_s21 = scalar_lea.vmem %s16_s13, 4096  ;;  %p515_p4 = scmp.lt.s32.totalorder %s16_s13, %s16_s13 }
   0x9   :  { %p511_p3 = scmp.ne.s32.totalorder %s16_s13, %s510_s21  ;;  %p516_p5 = scmp.lt.s32.totalorder %s510_s21, %s510_s21 }
   0xb   :  { %p517_p6 = por %p516_p5, %p515_p4 }
   0xd   :  { %p518_p7 = pnand %p517_p6, %p511_p3 }
   0xf   :  { %521 = shalt.err (!%p518_p7)
}
  0x10   :  { %s549_s22 = smov 128   ;;  %s550_s23 = smov 8  }
  0x11   :  { %21 = dma.hbm_to_vmem [thread:$0]  %s791_s0, 4096, %s16_s13, [#allocation3], %s549_s22, %s549_s22, %s550_s23  }
  0x12   :  { %544 = dma.done.wait [#allocation3], 4096  }
  0x13   :  { %545 = vsyncadd [#allocation3], 4294963200  ;;  %v492_v0 = vld [vmem:[%s792_s1] sm:$0xff]   ;;  %v493_v1 = vld [vmem:[%s792_s1 + $0x8] sm:$0xff]  }
  0x14   :  { %424 = vmatprep.subr.bf16.mxu0 %v492_v0  ;;  %472 = vmatprep.subr.bf16.mxu1 %v492_v0  ;;  %v494_v2 = vld [vmem:[%s792_s1 + $0x10] sm:$0xff]   ;;  %v495_v3 = vld [vmem:[%s792_s1 + $0x18] sm:$0xff]   ;;  %v599_v4 = vld [vmem:[#allocation2] sm:$0xff] }
  0x15   :  { %425 = vmatpush3.bf16.msra.mxu0 %v492_v0  ;;  %480 = vmatpush3.bf16.msra.mxu1 %v492_v0  ;;  %v601_v5 = vld [vmem:[#allocation2 + $0x8] sm:$0xff]  ;;  %v603_v6 = vld [vmem:[#allocation2 + $0x80] sm:$0xff]  ;;  %v498_v12 = vld [vmem:[%s792_s1 + $0x30] sm:$0xff]  }
  0x16   :  { %426 = vmatprep.subr.bf16.mxu0 %v493_v1  ;;  %473 = vmatprep.subr.bf16.mxu1 %v493_v1  ;;  %v62_v7 = vpack.c.bf16 %v601_v5, %v599_v4  ;;  %v607_v8 = vld [vmem:[#allocation2 + $0x88] sm:$0xff]  ;;  %v496_v10 = vld [vmem:[%s792_s1 + $0x20] sm:$0xff]   ;;  %v499_v13 = vld [vmem:[%s792_s1 + $0x38] sm:$0xff]  }
  0x17   :  { %v70_v9 = vpack.c.bf16 %v607_v8, %v603_v6  ;;  %v497_v11 = vld [vmem:[%s792_s1 + $0x28] sm:$0xff]   ;;  %v623_v14 = vld [vmem:[#allocation2 + $0x10] sm:$0xff]  ;;  %v625_v15 = vld [vmem:[#allocation2 + $0x18] sm:$0xff] }
  0x18   :  { %440 = vmatprep.mubr.bf16.mxu0 %v62_v7  ;;  %v627_v16 = vld [vmem:[#allocation2 + $0x90] sm:$0xff]  ;;  %v629_v17 = vld [vmem:[#allocation2 + $0x98] sm:$0xff]  ;;  %v631_v18 = vld [vmem:[#allocation2 + $0x20] sm:$0xff]  ;;  %v63_v22 = vpack.c.bf16 %v625_v15, %v623_v14 }
  0x19   :  { %427 = vmatpush3.bf16.msra.mxu0 %v493_v1  ;;  %481 = vmatpush3.bf16.msra.mxu1 %v493_v1  ;;  %v633_v19 = vld [vmem:[#allocation2 + $0x28] sm:$0xff]  ;;  %v635_v20 = vld [vmem:[#allocation2 + $0xa0] sm:$0xff]  ;;  %v71_v23 = vpack.c.bf16 %v629_v17, %v627_v16  ;;  %v647_v26 = vld [vmem:[#allocation2 + $0x30] sm:$0xff] }
  0x1a   :  { %428 = vmatprep.subr.bf16.mxu0 %v494_v2  ;;  %474 = vmatprep.subr.bf16.mxu1 %v494_v2  ;;  %v637_v21 = vld [vmem:[#allocation2 + $0xa8] sm:$0xff]  ;;  %v64_v24 = vpack.c.bf16 %v633_v19, %v631_v18  ;;  %v649_v27 = vld [vmem:[#allocation2 + $0x38] sm:$0xff]  ;;  %v651_v28 = vld [vmem:[#allocation2 + $0xb0] sm:$0xff] }
  0x1b   :  { %456 = vmatprep.mubr.bf16.mxu1 %v70_v9  ;;  %v72_v25 = vpack.c.bf16 %v637_v21, %v635_v20  ;;  %v653_v29 = vld [vmem:[#allocation2 + $0xb8] sm:$0xff]  ;;  %v655_v30 = vld [vmem:[#allocation2 + $0x40] sm:$0xff]  ;;  %v657_v31 = vld [vmem:[#allocation2 + $0x48] sm:$0xff]  ;;  %v65_v34 = vpack.c.bf16 %v649_v27, %v647_v26 }
  0x1c   :  { %v659_v32 = vld [vmem:[#allocation2 + $0xc0] sm:$0xff]  ;;  %v661_v33 = vld [vmem:[#allocation2 + $0xc8] sm:$0xff]  ;;  %v73_v35 = vpack.c.bf16 %v653_v29, %v651_v28  ;;  %v66_v36 = vpack.c.bf16 %v657_v31, %v655_v30  ;;  %v671_v38 = vld [vmem:[#allocation2 + $0x50] sm:$0xff] }
  0x1d   :  { %429 = vmatpush3.bf16.msra.mxu0 %v494_v2  ;;  %482 = vmatpush3.bf16.msra.mxu1 %v494_v2  ;;  %v74_v37 = vpack.c.bf16 %v661_v33, %v659_v32  ;;  %v673_v39 = vld [vmem:[#allocation2 + $0x58] sm:$0xff]  ;;  %v675_v40 = vld [vmem:[#allocation2 + $0xd0] sm:$0xff]  ;;  %v679_v42 = vld [vmem:[#allocation2 + $0x60] sm:$0xff] }
  0x1e   :  { %430 = vmatprep.subr.bf16.mxu0 %v495_v3  ;;  %475 = vmatprep.subr.bf16.mxu1 %v495_v3  ;;  %v677_v41 = vld [vmem:[#allocation2 + $0xd8] sm:$0xff]  ;;  %v681_v43 = vld [vmem:[#allocation2 + $0x68] sm:$0xff]  ;;  %v683_v44 = vld [vmem:[#allocation2 + $0xe0] sm:$0xff]  ;;  %v67_v46 = vpack.c.bf16 %v673_v39, %v671_v38 }
  0x1f   :  { %v685_v45 = vld [vmem:[#allocation2 + $0xe8] sm:$0xff]  ;;  %v75_v47 = vpack.c.bf16 %v677_v41, %v675_v40  ;;  %v68_v48 = vpack.c.bf16 %v681_v43, %v679_v42  ;;  %v695_v50 = vld [vmem:[#allocation2 + $0x70] sm:$0xff]  ;;  %v697_v51 = vld [vmem:[#allocation2 + $0x78] sm:$0xff] }
  0x20   :  { %v76_v49 = vpack.c.bf16 %v685_v45, %v683_v44  ;;  %v699_v52 = vld [vmem:[#allocation2 + $0xf0] sm:$0xff]  ;;  %v701_v53 = vld [vmem:[#allocation2 + $0xf8] sm:$0xff]  ;;  %v69_v54 = vpack.c.bf16 %v697_v51, %v695_v50  ;;  %v710_v56 = vld [vmem:[%s793_s2] ss:$0 sm:$0xff]  ;;  %s551_s2 = smov [#allocation5]  }
  0x21   :  { %431 = vmatpush3.bf16.msra.mxu0 %v495_v3  ;;  %483 = vmatpush3.bf16.msra.mxu1 %v495_v3  ;;  %v77_v55 = vpack.c.bf16 %v701_v53, %v699_v52  ;;  %s379_s15 = sshll.u32 %s551_s2, 4  ;;  %s380_s15 = int_to_ptr.vmem [resolvable:$true] %s379_s15 }
  0x22   :  { %432 = vmatprep.subr.bf16.mxu0 %v496_v10  ;;  %476 = vmatprep.subr.bf16.mxu1 %v496_v10  ;;  %s522_s16 = scalar_lea.vmem %s380_s15, 4096  ;;  %p527_p9 = scmp.lt.s32.totalorder %s380_s15, %s380_s15 }
  0x23   :  { %p523_p8 = scmp.ne.s32.totalorder %s380_s15, %s522_s16  ;;  %p528_p10 = scmp.lt.s32.totalorder %s522_s16, %s522_s16 }
  0x25   :  { %433 = vmatpush3.bf16.msra.mxu0 %v496_v10  ;;  %484 = vmatpush3.bf16.msra.mxu1 %v496_v10  ;;  %p529_p11 = por %p528_p10, %p527_p9 }
  0x26   :  { %434 = vmatprep.subr.bf16.mxu0 %v497_v11  ;;  %477 = vmatprep.subr.bf16.mxu1 %v497_v11 }
  0x27   :  { %p530_p12 = pnand %p529_p11, %p523_p8 }
  0x29   :  { %435 = vmatpush3.bf16.msra.mxu0 %v497_v11  ;;  %485 = vmatpush3.bf16.msra.mxu1 %v497_v11 }
  0x2a   :  { %436 = vmatprep.subr.bf16.mxu0 %v498_v12  ;;  %478 = vmatprep.subr.bf16.mxu1 %v498_v12 }
  0x2d   :  { %437 = vmatpush3.bf16.msra.mxu0 %v498_v12  ;;  %486 = vmatpush3.bf16.msra.mxu1 %v498_v12 }
  0x2e   :  { %438 = vmatprep.subr.bf16.mxu0 %v499_v13  ;;  %479 = vmatprep.subr.bf16.mxu1 %v499_v13 }
  0x31   :  { %439 = vmatpush3.bf16.msra.mxu0 %v499_v13  ;;  %487 = vmatpush3.bf16.msra.mxu1 %v499_v13 }
  0x34   :  { %441 = vmatmul.mubr.bf16.vlgmr.msra.gmra.mrb[0].mxu0 %v63_v22  ;;  %457 = vmatmul.mubr.bf16.vlgmr.msra.gmra.mrb[0].mxu1 %v71_v23 }
  0x35   :  { %444 = vmatprep.mubr.bf16.mxu0 %v64_v24  ;;  %460 = vmatprep.mubr.bf16.mxu1 %v72_v25 }
  0x3c   :  { %445 = vmatmul.mubr.bf16.gmra.mrb[4].mxu0 %v65_v34  ;;  %461 = vmatmul.mubr.bf16.gmra.mrb[4].mxu1 %v73_v35 }
  0x3d   :  { %448 = vmatprep.mubr.bf16.mxu0 %v66_v36  ;;  %464 = vmatprep.mubr.bf16.mxu1 %v74_v37 }
  0x44   :  { %449 = vmatmul.mubr.bf16.gmra.mrb[8].mxu0 %v67_v46  ;;  %465 = vmatmul.mubr.bf16.gmra.mrb[8].mxu1 %v75_v47 }
  0x45   :  { %452 = vmatprep.mubr.bf16.mxu0 %v68_v48  ;;  %468 = vmatprep.mubr.bf16.mxu1 %v76_v49 }
  0x4c   :  { %453 = vmatmul.mubr.bf16.gmra.mrb[12].mxu0 %v69_v54  ;;  %469 = vmatmul.mubr.bf16.gmra.mrb[12].mxu1 %v77_v55 }
 0x107   :  { %v442_v57 = vpop.f32.mrb[0].mxu0  ;;  %v458_v58 = vpop.f32.mrb[0].mxu1 }
 0x108   :  { %v192_v59 = vadd.f32 %v442_v57, %v710_v56  ;;  %v256_v60 = vadd.f32 %v458_v58, %v710_v56  ;;  %v183_v61 = vpop.f32.mrb[1].mxu0  ;;  %v247_v62 = vpop.f32.mrb[1].mxu1 }
 0x109   :  { %v184_v63 = vadd.f32 %v710_v56, %v183_v61  ;;  %v248_v0 = vadd.f32 %v710_v56, %v247_v62  ;;  %v443_v1 = vpop.f32.mrb[2].mxu0  ;;  %v459_v2 = vpop.f32.mrb[2].mxu1 }
 0x10a   :  { %v312_v3 = vadd.f32 %v192_v59, %v623_v14  ;;  %v328_v7 = vadd.f32 %v256_v60, %v627_v16  ;;  %v195_v9 = vadd.f32 %v443_v1, %v710_v56  ;;  %v259_v10 = vadd.f32 %v459_v2, %v710_v56  ;;  %v186_v11 = vpop.f32.mrb[3].mxu0  ;;  %v250_v12 = vpop.f32.mrb[3].mxu1 }
 0x10b   :  { %v310_v13 = vadd.f32 %v184_v63, %v599_v4  ;;  %v326_v22 = vadd.f32 %v248_v0, %v603_v6  ;;  %v187_v23 = vadd.f32 %v710_v56, %v186_v11  ;;  %v251_v24 = vadd.f32 %v710_v56, %v250_v12 }
 0x10c   :  { %344 = vst [vmem:[#allocation5 + $0x10] sm:$0xff] %v312_v3  ;;  %360 = vst [vmem:[#allocation5 + $0x90] sm:$0xff] %v328_v7  ;;  %v313_v14 = vadd.f32 %v195_v9, %v625_v15  ;;  %v329_v16 = vadd.f32 %v259_v10, %v629_v17 }
 0x10d   :  { %342 = vst [vmem:[#allocation5] sm:$0xff] %v310_v13  ;;  %358 = vst [vmem:[#allocation5 + $0x80] sm:$0xff] %v326_v22  ;;  %v311_v25 = vadd.f32 %v187_v23, %v601_v5  ;;  %v327_v34 = vadd.f32 %v251_v24, %v607_v8 }
 0x10e   :  { %345 = vst [vmem:[#allocation5 + $0x18] sm:$0xff] %v313_v14  ;;  %361 = vst [vmem:[#allocation5 + $0x98] sm:$0xff] %v329_v16 }
 0x10f   :  { %343 = vst [vmem:[#allocation5 + $0x8] sm:$0xff] %v311_v25  ;;  %359 = vst [vmem:[#allocation5 + $0x88] sm:$0xff] %v327_v34  ;;  %v446_v4 = vpop.f32.mrb[4].mxu0  ;;  %v462_v6 = vpop.f32.mrb[4].mxu1 }
 0x110   :  { %v208_v35 = vadd.f32 %v446_v4, %v710_v56  ;;  %v272_v36 = vadd.f32 %v462_v6, %v710_v56  ;;  %v199_v37 = vpop.f32.mrb[5].mxu0  ;;  %v263_v15 = vpop.f32.mrb[5].mxu1 }
 0x111   :  { %v200_v17 = vadd.f32 %v710_v56, %v199_v37  ;;  %v264_v46 = vadd.f32 %v710_v56, %v263_v15  ;;  %v447_v47 = vpop.f32.mrb[6].mxu0  ;;  %v463_v5 = vpop.f32.mrb[6].mxu1 }
 0x112   :  { %v316_v8 = vadd.f32 %v208_v35, %v647_v26  ;;  %v332_v48 = vadd.f32 %v272_v36, %v651_v28  ;;  %v211_v49 = vadd.f32 %v447_v47, %v710_v56  ;;  %v275_v54 = vadd.f32 %v463_v5, %v710_v56  ;;  %v202_v55 = vpop.f32.mrb[7].mxu0  ;;  %v266_v57 = vpop.f32.mrb[7].mxu1 }
 0x113   :  { %v314_v58 = vadd.f32 %v200_v17, %v631_v18  ;;  %v330_v59 = vadd.f32 %v264_v46, %v635_v20  ;;  %v203_v60 = vadd.f32 %v710_v56, %v202_v55  ;;  %v267_v61 = vadd.f32 %v710_v56, %v266_v57 }
 0x114   :  { %348 = vst [vmem:[#allocation5 + $0x30] sm:$0xff] %v316_v8  ;;  %364 = vst [vmem:[#allocation5 + $0xb0] sm:$0xff] %v332_v48  ;;  %v317_v26 = vadd.f32 %v211_v49, %v649_v27  ;;  %v333_v28 = vadd.f32 %v275_v54, %v653_v29 }
 0x115   :  { %346 = vst [vmem:[#allocation5 + $0x20] sm:$0xff] %v314_v58  ;;  %362 = vst [vmem:[#allocation5 + $0xa0] sm:$0xff] %v330_v59  ;;  %v315_v62 = vadd.f32 %v203_v60, %v633_v19  ;;  %v331_v63 = vadd.f32 %v267_v61, %v637_v21 }
 0x116   :  { %349 = vst [vmem:[#allocation5 + $0x38] sm:$0xff] %v317_v26  ;;  %365 = vst [vmem:[#allocation5 + $0xb8] sm:$0xff] %v333_v28 }
 0x117   :  { %347 = vst [vmem:[#allocation5 + $0x28] sm:$0xff] %v315_v62  ;;  %363 = vst [vmem:[#allocation5 + $0xa8] sm:$0xff] %v331_v63  ;;  %v450_v18 = vpop.f32.mrb[8].mxu0  ;;  %v466_v20 = vpop.f32.mrb[8].mxu1 }
 0x118   :  { %v224_v0 = vadd.f32 %v450_v18, %v710_v56  ;;  %v288_v1 = vadd.f32 %v466_v20, %v710_v56  ;;  %v215_v2 = vpop.f32.mrb[9].mxu0  ;;  %v279_v27 = vpop.f32.mrb[9].mxu1 }
 0x119   :  { %v216_v29 = vadd.f32 %v710_v56, %v215_v2  ;;  %v280_v3 = vadd.f32 %v710_v56, %v279_v27  ;;  %v451_v7 = vpop.f32.mrb[10].mxu0  ;;  %v467_v19 = vpop.f32.mrb[10].mxu1 }
 0x11a   :  { %v320_v21 = vadd.f32 %v224_v0, %v671_v38  ;;  %v336_v9 = vadd.f32 %v288_v1, %v675_v40  ;;  %v227_v10 = vadd.f32 %v451_v7, %v710_v56  ;;  %v291_v11 = vadd.f32 %v467_v19, %v710_v56  ;;  %v218_v12 = vpop.f32.mrb[11].mxu0  ;;  %v282_v13 = vpop.f32.mrb[11].mxu1 }
 0x11b   :  { %v318_v22 = vadd.f32 %v216_v29, %v655_v30  ;;  %v334_v23 = vadd.f32 %v280_v3, %v659_v32  ;;  %v219_v24 = vadd.f32 %v710_v56, %v218_v12  ;;  %v283_v14 = vadd.f32 %v710_v56, %v282_v13 }
 0x11c   :  { %352 = vst [vmem:[#allocation5 + $0x50] sm:$0xff] %v320_v21  ;;  %368 = vst [vmem:[#allocation5 + $0xd0] sm:$0xff] %v336_v9  ;;  %v321_v38 = vadd.f32 %v227_v10, %v673_v39  ;;  %v337_v40 = vadd.f32 %v291_v11, %v677_v41 }
 0x11d   :  { %350 = vst [vmem:[#allocation5 + $0x40] sm:$0xff] %v318_v22  ;;  %366 = vst [vmem:[#allocation5 + $0xc0] sm:$0xff] %v334_v23  ;;  %v319_v16 = vadd.f32 %v219_v24, %v657_v31  ;;  %v335_v25 = vadd.f32 %v283_v14, %v661_v33 }
 0x11e   :  { %353 = vst [vmem:[#allocation5 + $0x58] sm:$0xff] %v321_v38  ;;  %369 = vst [vmem:[#allocation5 + $0xd8] sm:$0xff] %v337_v40 }
 0x11f   :  { %351 = vst [vmem:[#allocation5 + $0x48] sm:$0xff] %v319_v16  ;;  %367 = vst [vmem:[#allocation5 + $0xc8] sm:$0xff] %v335_v25  ;;  %v454_v30 = vpop.f32.mrb[12].mxu0  ;;  %v470_v32 = vpop.f32.mrb[12].mxu1 }
 0x120   :  { %v240_v34 = vadd.f32 %v454_v30, %v710_v56  ;;  %v304_v4 = vadd.f32 %v470_v32, %v710_v56  ;;  %v231_v6 = vpop.f32.mrb[13].mxu0  ;;  %v295_v39 = vpop.f32.mrb[13].mxu1 }
 0x121   :  { %v232_v41 = vadd.f32 %v710_v56, %v231_v6  ;;  %v296_v35 = vadd.f32 %v710_v56, %v295_v39  ;;  %v455_v36 = vpop.f32.mrb[14].mxu0  ;;  %v471_v31 = vpop.f32.mrb[14].mxu1 }
 0x122   :  { %v324_v33 = vadd.f32 %v240_v34, %v695_v50  ;;  %v340_v37 = vadd.f32 %v304_v4, %v699_v52  ;;  %v243_v15 = vadd.f32 %v455_v36, %v710_v56  ;;  %v307_v17 = vadd.f32 %v471_v31, %v710_v56  ;;  %v234_v46 = vpop.f32.mrb[15].mxu0  ;;  %v298_v47 = vpop.f32.mrb[15].mxu1 }
 0x123   :  { %v322_v5 = vadd.f32 %v232_v41, %v679_v42  ;;  %v338_v8 = vadd.f32 %v296_v35, %v683_v44  ;;  %v235_v48 = vadd.f32 %v710_v56, %v234_v46  ;;  %v299_v49 = vadd.f32 %v710_v56, %v298_v47 }
 0x124   :  { %356 = vst [vmem:[#allocation5 + $0x70] sm:$0xff] %v324_v33  ;;  %372 = vst [vmem:[#allocation5 + $0xf0] sm:$0xff] %v340_v37  ;;  %v325_v50 = vadd.f32 %v243_v15, %v697_v51  ;;  %v341_v52 = vadd.f32 %v307_v17, %v701_v53 }
 0x125   :  { %354 = vst [vmem:[#allocation5 + $0x60] sm:$0xff] %v322_v5  ;;  %370 = vst [vmem:[#allocation5 + $0xe0] sm:$0xff] %v338_v8  ;;  %v323_v54 = vadd.f32 %v235_v48, %v681_v43  ;;  %v339_v55 = vadd.f32 %v299_v49, %v685_v45 }
 0x126   :  { %357 = vst [vmem:[#allocation5 + $0x78] sm:$0xff] %v325_v50  ;;  %373 = vst [vmem:[#allocation5 + $0xf8] sm:$0xff] %v341_v52 }
 0x127   :  { %355 = vst [vmem:[#allocation5 + $0x68] sm:$0xff] %v323_v54  ;;  %371 = vst [vmem:[#allocation5 + $0xe8] sm:$0xff] %v339_v55 }
 0x128   :  { %533 = shalt.err (!%p530_p12)
}
 0x129   :  { %s534_s19 = scalar_lea.hbm %s794_s3, 4096 }
 0x12a   :  { %p535_p13 = scmp.ne.s32.totalorder %s794_s3, %s534_s19  ;;  %p538_p0 = scmp.lt.u32.totalorder %s534_s19, %s794_s3 }
 0x12c   :  { %p540_p1 = pnand %p538_p0, %p535_p13 }
 0x12e   :  { %543 = shalt.err (!%p540_p1)
}
 0x12f   :  { %385 = dma.vmem_to_hbm [thread:$0]  %s380_s15, 4096, %s794_s3, [#allocation4], %s549_s22, %s549_s22, %s550_s23  }
 0x130   :  { %546 = dma.done.wait [#allocation4], 4096  }
 0x131   :  { %547 = vsyncadd [#allocation4], 4294963200 }
 0x132   :  { %389 = vsyncpa [#allocation3], 1 }
 0x133   :  { %390 = vsyncpa [#allocation4], 1 }

</bundles_post_ra>
